<compile_context>
chip_gen: v7x
topology: tpu7x:2x2x1
jax: 0.10.0
libtpu: 0.0.40
codegen_flags: <defaults>
</compile_context>

<pallas_src>
import jax
import jax.numpy as jnp
from jax.experimental import pallas as pl
from jax.experimental.pallas import tpu as pltpu


def _gelu(x):
    # exact (erf-based) GELU, matching torch.nn.GELU() default
    return x * 0.5 * (1.0 + jax.lax.erf(x * 0.7071067811865475))


def _layernorm(x, gamma, beta, eps=1e-5):
    mean = jnp.mean(x, axis=-1, keepdims=True)
    d = x - mean
    var = jnp.mean(d * d, axis=-1, keepdims=True)
    return d * jax.lax.rsqrt(var + eps) * gamma + beta


# ---------------------------------------------------------------------------
# Kernel
# ---------------------------------------------------------------------------
def masked_feature_encoder_kernel(
    fm_ref,                                   # [TB, 2F] packed (feats | masks)
    stats_ref,                                # [3, F]  closed-form LN1 constants
    wg_ref, bg_ref, be1_ref, c1_ref,          # [F, H] folded per-feature weights
    w23_ref, c0_ref,                          # [F*H, H], [1, H]
    ln3g_ref, ln3b_ref,                       # [1, H]
    w4_ref, b4_ref,                           # [H, O], [1, O]
    out_ref,                                  # [TB, O]
):
    eps = 1e-5
    F = stats_ref.shape[1]

    fm = fm_ref[...]
    feats = fm[:, :F]                         # [TB, F]
    masks = fm[:, F:]                         # [TB, F], values in {0, 1}

    # Closed-form per-feature LayerNorm statistics (pure VPU on [TB, F]):
    #   var_i = f^2 * Var(W1_i) + 2 f * Cov(W1_i, b1_i) + Var(b1_i)
    stats = stats_ref[...]
    a2 = stats[0:1, :]
    a1 = stats[1:2, :]
    a0 = stats[2:3, :]
    var = (feats * feats) * a2 + feats * a1 + a0
    inv = jax.lax.rsqrt(var + eps)            # [TB, F]
    p = feats * inv                           # [TB, F]

    wg = wg_ref[...]                          # (W1_i - mean W1_i) * gamma1_i
    bg = bg_ref[...]                          # (b1_i - mean b1_i) * gamma1_i
    be1 = be1_ref[...]                        # beta1_i
    c1 = c1_ref[...]                          # mask-embedding bias rows

    # Per-feature chunks via VPU broadcasts only (F = 6, static unroll):
    #   h_i = p_i*Wg_i + q_i*Bg_i + beta1_i ; GELU ; mask ; accumulate bias.
    chunks = []
    mbias = None
    for i in range(F):
        pi = p[:, i:i + 1]                    # [TB, 1]
        qi = inv[:, i:i + 1]
        mi = masks[:, i:i + 1]
        h = pi * wg[i:i + 1, :] + qi * bg[i:i + 1, :] + be1[i:i + 1, :]
        h = _gelu(h)
        chunks.append(h * mi)
        contrib = mi * c1[i:i + 1, :]         # [TB, H] mask-embedding bias
        mbias = contrib if mbias is None else mbias + contrib

    hm = jnp.concatenate(chunks, axis=-1)     # [TB, F*H] (lane-128-aligned concat)

    # The only large matmul: folded (W2_i @ W3_i) stack.
    g_pre = (jnp.dot(hm, w23_ref[...], preferred_element_type=jnp.float32)
             + mbias + c0_ref[...])           # [TB, H]

    # final_proj: LayerNorm(H) -> GELU -> Linear(H, O)   (Dropout = identity)
    mu = jnp.mean(g_pre, axis=-1, keepdims=True)
    d = g_pre - mu
    var3 = jnp.mean(d * d, axis=-1, keepdims=True)
    g = d * jax.lax.rsqrt(var3 + eps) * ln3g_ref[...] + ln3b_ref[...]
    g = _gelu(g)

    out_ref[...] = (jnp.dot(g, w4_ref[...], preferred_element_type=jnp.float32)
                    + b4_ref[...])


# ---------------------------------------------------------------------------
# Parameters (torch-layout, [in, out] convention) and host-side folding
# ---------------------------------------------------------------------------
def make_params(key, num_features=6, hidden_dim=128, output_dim=64):
    H, Hh = hidden_dim, hidden_dim // 2
    ks = jax.random.split(key, 8)

    def u(k, shape, fan_in):
        bound = 1.0 / jnp.sqrt(jnp.float32(fan_in))
        return jax.random.uniform(k, shape, jnp.float32, -bound, bound)

    return dict(
        w1=u(ks[0], (num_features, 1, H), 1),               # Linear(1, H)
        b1=u(ks[1], (num_features, 1, H), 1),
        ln1_g=jnp.ones((num_features, 1, H), jnp.float32),
        ln1_b=jnp.zeros((num_features, 1, H), jnp.float32),
        w2=u(ks[2], (num_features, H, Hh), H),               # Linear(H, H//2)
        b2=u(ks[3], (num_features, 1, Hh), H),
        emb=jax.random.normal(ks[4], (2, Hh), jnp.float32),  # nn.Embedding(2, H//2)
        w3=u(ks[5], (num_features * Hh, H), num_features * Hh),
        b3=u(ks[6], (1, H), num_features * Hh),
        ln3_g=jnp.ones((1, H), jnp.float32),
        ln3_b=jnp.zeros((1, H), jnp.float32),
        w4=u(ks[7], (H, output_dim), H),
        b4=jnp.zeros((1, output_dim), jnp.float32),
    )


def fold_params(params):
    """Precompute the fused weight layout consumed by the kernel (once)."""
    hp = jax.lax.Precision.HIGHEST            # exact-f32 host-side folding
    F, _, H = params["w1"].shape
    Hh = params["w2"].shape[2]

    w1 = params["w1"][:, 0, :]                # [F, H]
    b1 = params["b1"][:, 0, :]
    g1 = params["ln1_g"][:, 0, :]
    be1 = params["ln1_b"][:, 0, :]

    # Closed-form LN1 constants (centered form, numerically safe).
    mW = jnp.mean(w1, axis=1, keepdims=True)
    mB = jnp.mean(b1, axis=1, keepdims=True)
    wc = w1 - mW
    bc = b1 - mB
    a2 = jnp.mean(wc * wc, axis=1)            # Var(W1_i)
    a1 = 2.0 * jnp.mean(wc * bc, axis=1)      # 2*Cov(W1_i, b1_i)
    a0 = jnp.mean(bc * bc, axis=1)            # Var(b1_i)
    stats = jnp.stack([a2, a1, a0], axis=0)   # [3, F]

    wg = wc * g1                              # [F, H]
    bg = bc * g1                              # [F, H]

    w2 = params["w2"]                         # [F, H, Hh]
    b2 = params["b2"][:, 0, :]                # [F, Hh]
    emb = params["emb"]                       # [2, Hh]
    w3s = params["w3"].reshape(F, Hh, H)      # W3_i

    w23 = jnp.einsum("fhk,fko->fho", w2, w3s, precision=hp).reshape(F * H, H)
    c1 = jnp.einsum("fk,fko->fo", b2 + (emb[1] - emb[0])[None, :], w3s,
                    precision=hp)             # [F, H]
    c0 = (jnp.einsum("k,fko->o", emb[0], w3s, precision=hp)[None, :]
          + params["b3"])                     # [1, H]

    return dict(
        stats=stats, wg=wg, bg=bg, be1=be1, c1=c1,
        w23=w23, c0=c0,
        ln3_g=params["ln3_g"], ln3_b=params["ln3_b"],
        w4=params["w4"], b4=params["b4"],
    )


# ---------------------------------------------------------------------------
# Wrapper
# ---------------------------------------------------------------------------
def masked_feature_encoder(features, masks, fused, *, tile_b=512):
    """features, masks: lists (length num_features) of [B] arrays."""
    feats = jnp.stack(features, axis=-1).astype(jnp.float32)   # [B, F]
    msk = jnp.stack(masks, axis=-1).astype(jnp.float32)        # [B, F]
    fm = jnp.concatenate([feats, msk], axis=-1)                # [B, 2F] packed
    B, F2 = fm.shape
    out_dim = fused["w4"].shape[1]

    def rup(x, m):
        return ((x + m - 1) // m) * m

    # Tile choice: rows a multiple of 8; capped at tile_b so live [TB, F*H]
    # f32 temps stay a few MiB (safe vs. v7x's 64 MiB physical VMEM); aim for
    # >=2 roughly balanced grid steps whenever B allows so both v7x
    # TensorCores get work under dimension_semantics=("parallel",).
    n_steps = max(2, pl.cdiv(B, tile_b))
    TILE_B = min(rup(B, 8), rup(pl.cdiv(B, n_steps), 8))
    grid = (pl.cdiv(B, TILE_B),)

    def row_spec(cols):
        return pl.BlockSpec((TILE_B, cols), lambda i: (i, 0))

    def full_spec(arr):
        # Constant index_map -> weight tile stays resident across grid steps.
        return pl.BlockSpec(arr.shape, lambda i: (0, 0))

    weights = (fused["stats"], fused["wg"], fused["bg"], fused["be1"],
               fused["c1"], fused["w23"], fused["c0"],
               fused["ln3_g"], fused["ln3_b"], fused["w4"], fused["b4"])

    in_specs = [row_spec(F2)] + [full_spec(w) for w in weights]

    return pl.pallas_call(
        masked_feature_encoder_kernel,
        out_shape=jax.ShapeDtypeStruct((B, out_dim), jnp.float32),
        grid=grid,
        in_specs=in_specs,
        out_specs=row_spec(out_dim),
        compiler_params=pltpu.CompilerParams(
            dimension_semantics=("parallel",),
            vmem_limit_bytes=32 * 1024 * 1024,
        ),
    )(fm, *weights)


# ---------------------------------------------------------------------------
# Pure-JAX reference mirroring the PyTorch forward (eval mode)
# ---------------------------------------------------------------------------
def masked_feature_encoder_ref(features, masks, params):
    feats = jnp.stack(features, axis=-1).astype(jnp.float32)
    msk = jnp.stack(masks, axis=-1).astype(jnp.float32)
    F = feats.shape[1]
    emb = params["emb"]
    chunks = []
    for i in range(F):
        f = feats[:, i:i + 1]
        m = msk[:, i:i + 1]
        h = f * params["w1"][i] + params["b1"][i]
        h = _layernorm(h, params["ln1_g"][i], params["ln1_b"][i])
        h = _gelu(h)
        h2 = h @ params["w2"][i] + params["b2"][i]
        mask_enc = m * emb[1:2] + (1.0 - m) * emb[0:1]
        chunks.append(h2 * m + mask_enc)
    all_feat = jnp.concatenate(chunks, axis=-1)
    g = all_feat @ params["w3"] + params["b3"]
    g = _layernorm(g, params["ln3_g"], params["ln3_b"])
    g = _gelu(g)
    return g @ params["w4"] + params["b4"]


if __name__ == "__main__":
    num_features, hidden_dim, output_dim = 6, 128, 64
    batch = 8

    key = jax.random.PRNGKey(0)
    pkey, fkey, mkey = jax.random.split(key, 3)
    params = make_params(pkey, num_features, hidden_dim, output_dim)
    fused = fold_params(params)   # one-time host-side weight folding

    fkeys = jax.random.split(fkey, num_features)
    mkeys = jax.random.split(mkey, num_features)
    features = [jax.random.normal(fkeys[i], (batch,), jnp.float32)
                for i in range(num_features)]
    masks = [jax.random.bernoulli(mkeys[i], 0.7, (batch,)).astype(jnp.float32)
             for i in range(num_features)]

    out = masked_feature_encoder(features, masks, fused)
    out = jax.block_until_ready(out)

    ref = masked_feature_encoder_ref(features, masks, params)
    assert out.shape == (batch, output_dim)
    assert jnp.allclose(out, ref, atol=1e-4, rtol=1e-4), "mismatch vs. JAX reference"

    print("KERNEL_OK")
</pallas_src>

<mosaic_0001>
module attributes {stable_mosaic.version = 11 : i64} {
  func.func @masked_feature_encoder_kernel(%arg0: i32, %arg1: memref<8x12xf32, #tpu.memory_space<vmem>>, %arg2: memref<3x6xf32, #tpu.memory_space<vmem>>, %arg3: memref<6x128xf32, #tpu.memory_space<vmem>>, %arg4: memref<6x128xf32, #tpu.memory_space<vmem>>, %arg5: memref<6x128xf32, #tpu.memory_space<vmem>>, %arg6: memref<6x128xf32, #tpu.memory_space<vmem>>, %arg7: memref<768x128xf32, #tpu.memory_space<vmem>>, %arg8: memref<1x128xf32, #tpu.memory_space<vmem>>, %arg9: memref<1x128xf32, #tpu.memory_space<vmem>>, %arg10: memref<1x128xf32, #tpu.memory_space<vmem>>, %arg11: memref<128x64xf32, #tpu.memory_space<vmem>>, %arg12: memref<1x64xf32, #tpu.memory_space<vmem>>, %arg13: memref<8x64xf32, #tpu.memory_space<vmem>>) attributes {dimension_semantics = [#tpu.dimension_semantics<parallel>], iteration_bounds = array<i64: 1>, scalar_prefetch = 0 : i64, scratch_operands = 0 : i64, tpu.core_type = #tpu.core_type<tc>, window_params = [{transform_indices = @transform_0, window_bounds = array<i64: 8, 12>}, {pipeline_mode = #tpu.pipeline_mode<synchronous>, transform_indices = @transform_1, window_bounds = array<i64: 3, 6>}, {pipeline_mode = #tpu.pipeline_mode<synchronous>, transform_indices = @transform_2, window_bounds = array<i64: 6, 128>}, {pipeline_mode = #tpu.pipeline_mode<synchronous>, transform_indices = @transform_3, window_bounds = array<i64: 6, 128>}, {pipeline_mode = #tpu.pipeline_mode<synchronous>, transform_indices = @transform_4, window_bounds = array<i64: 6, 128>}, {pipeline_mode = #tpu.pipeline_mode<synchronous>, transform_indices = @transform_5, window_bounds = array<i64: 6, 128>}, {pipeline_mode = #tpu.pipeline_mode<synchronous>, transform_indices = @transform_6, window_bounds = array<i64: 768, 128>}, {pipeline_mode = #tpu.pipeline_mode<synchronous>, transform_indices = @transform_7, window_bounds = array<i64: 1, 128>}, {pipeline_mode = #tpu.pipeline_mode<synchronous>, transform_indices = @transform_8, window_bounds = array<i64: 1, 128>}, {pipeline_mode = #tpu.pipeline_mode<synchronous>, transform_indices = @transform_9, window_bounds = array<i64: 1, 128>}, {pipeline_mode = #tpu.pipeline_mode<synchronous>, transform_indices = @transform_10, window_bounds = array<i64: 128, 64>}, {pipeline_mode = #tpu.pipeline_mode<synchronous>, transform_indices = @transform_11, window_bounds = array<i64: 1, 64>}, {transform_indices = @transform_12, window_bounds = array<i64: 8, 64>}]} {
    %c0 = arith.constant 0 : index
    %c0_0 = arith.constant 0 : index
    %0 = vector.load %arg1[%c0, %c0_0] : memref<8x12xf32, #tpu.memory_space<vmem>>, vector<8x12xf32>
    %1 = vector.extract_strided_slice %0 {offsets = [0, 0], sizes = [8, 6], strides = [1, 1]} : vector<8x12xf32> to vector<8x6xf32>
    %2 = vector.extract_strided_slice %0 {offsets = [0, 6], sizes = [8, 6], strides = [1, 1]} : vector<8x12xf32> to vector<8x6xf32>
    %c0_1 = arith.constant 0 : index
    %c0_2 = arith.constant 0 : index
    %3 = vector.load %arg2[%c0_1, %c0_2] : memref<3x6xf32, #tpu.memory_space<vmem>>, vector<3x6xf32>
    %4 = vector.extract_strided_slice %3 {offsets = [0, 0], sizes = [1, 6], strides = [1, 1]} : vector<3x6xf32> to vector<1x6xf32>
    %5 = vector.extract_strided_slice %3 {offsets = [1, 0], sizes = [1, 6], strides = [1, 1]} : vector<3x6xf32> to vector<1x6xf32>
    %6 = vector.extract_strided_slice %3 {offsets = [2, 0], sizes = [1, 6], strides = [1, 1]} : vector<3x6xf32> to vector<1x6xf32>
    %7 = arith.mulf %1, %1 : vector<8x6xf32>
    %8 = vector.broadcast %4 : vector<1x6xf32> to vector<8x6xf32>
    %9 = arith.mulf %7, %8 : vector<8x6xf32>
    %10 = vector.broadcast %5 : vector<1x6xf32> to vector<8x6xf32>
    %11 = arith.mulf %1, %10 : vector<8x6xf32>
    %12 = arith.addf %9, %11 : vector<8x6xf32>
    %13 = vector.broadcast %6 : vector<1x6xf32> to vector<8x6xf32>
    %14 = arith.addf %12, %13 : vector<8x6xf32>
    %cst = arith.constant 9.99999974E-6 : f32
    %15 = vector.broadcast %cst : f32 to vector<8x6xf32>
    %16 = arith.addf %14, %15 : vector<8x6xf32>
    %17 = math.rsqrt %16 : vector<8x6xf32>
    %18 = arith.mulf %1, %17 : vector<8x6xf32>
    %c0_3 = arith.constant 0 : index
    %c0_4 = arith.constant 0 : index
    %19 = vector.load %arg3[%c0_3, %c0_4] : memref<6x128xf32, #tpu.memory_space<vmem>>, vector<6x128xf32>
    %c0_5 = arith.constant 0 : index
    %c0_6 = arith.constant 0 : index
    %20 = vector.load %arg4[%c0_5, %c0_6] : memref<6x128xf32, #tpu.memory_space<vmem>>, vector<6x128xf32>
    %c0_7 = arith.constant 0 : index
    %c0_8 = arith.constant 0 : index
    %21 = vector.load %arg5[%c0_7, %c0_8] : memref<6x128xf32, #tpu.memory_space<vmem>>, vector<6x128xf32>
    %c0_9 = arith.constant 0 : index
    %c0_10 = arith.constant 0 : index
    %22 = vector.load %arg6[%c0_9, %c0_10] : memref<6x128xf32, #tpu.memory_space<vmem>>, vector<6x128xf32>
    %23 = vector.extract_strided_slice %18 {offsets = [0, 0], sizes = [8, 1], strides = [1, 1]} : vector<8x6xf32> to vector<8x1xf32>
    %24 = vector.extract_strided_slice %17 {offsets = [0, 0], sizes = [8, 1], strides = [1, 1]} : vector<8x6xf32> to vector<8x1xf32>
    %25 = vector.extract_strided_slice %2 {offsets = [0, 0], sizes = [8, 1], strides = [1, 1]} : vector<8x6xf32> to vector<8x1xf32>
    %26 = vector.extract_strided_slice %19 {offsets = [0, 0], sizes = [1, 128], strides = [1, 1]} : vector<6x128xf32> to vector<1x128xf32>
    %27 = vector.broadcast %23 : vector<8x1xf32> to vector<8x128xf32>
    %28 = vector.broadcast %26 : vector<1x128xf32> to vector<8x128xf32>
    %29 = arith.mulf %27, %28 : vector<8x128xf32>
    %30 = vector.extract_strided_slice %20 {offsets = [0, 0], sizes = [1, 128], strides = [1, 1]} : vector<6x128xf32> to vector<1x128xf32>
    %31 = vector.broadcast %24 : vector<8x1xf32> to vector<8x128xf32>
    %32 = vector.broadcast %30 : vector<1x128xf32> to vector<8x128xf32>
    %33 = arith.mulf %31, %32 : vector<8x128xf32>
    %34 = arith.addf %29, %33 : vector<8x128xf32>
    %35 = vector.extract_strided_slice %21 {offsets = [0, 0], sizes = [1, 128], strides = [1, 1]} : vector<6x128xf32> to vector<1x128xf32>
    %36 = vector.broadcast %35 : vector<1x128xf32> to vector<8x128xf32>
    %37 = arith.addf %34, %36 : vector<8x128xf32>
    %cst_11 = arith.constant 5.000000e-01 : f32
    %38 = vector.broadcast %cst_11 : f32 to vector<8x128xf32>
    %39 = arith.mulf %37, %38 : vector<8x128xf32>
    %cst_12 = arith.constant 0.707106769 : f32
    %40 = vector.broadcast %cst_12 : f32 to vector<8x128xf32>
    %41 = arith.mulf %37, %40 : vector<8x128xf32>
    %42 = math.erf %41 : vector<8x128xf32>
    %cst_13 = arith.constant 1.000000e+00 : f32
    %43 = vector.broadcast %cst_13 : f32 to vector<8x128xf32>
    %44 = arith.addf %43, %42 : vector<8x128xf32>
    %45 = arith.mulf %39, %44 : vector<8x128xf32>
    %46 = vector.broadcast %25 : vector<8x1xf32> to vector<8x128xf32>
    %47 = arith.mulf %45, %46 : vector<8x128xf32>
    %48 = vector.extract_strided_slice %22 {offsets = [0, 0], sizes = [1, 128], strides = [1, 1]} : vector<6x128xf32> to vector<1x128xf32>
    %49 = vector.broadcast %25 : vector<8x1xf32> to vector<8x128xf32>
    %50 = vector.broadcast %48 : vector<1x128xf32> to vector<8x128xf32>
    %51 = arith.mulf %49, %50 : vector<8x128xf32>
    %52 = vector.extract_strided_slice %18 {offsets = [0, 1], sizes = [8, 1], strides = [1, 1]} : vector<8x6xf32> to vector<8x1xf32>
    %53 = vector.extract_strided_slice %17 {offsets = [0, 1], sizes = [8, 1], strides = [1, 1]} : vector<8x6xf32> to vector<8x1xf32>
    %54 = vector.extract_strided_slice %2 {offsets = [0, 1], sizes = [8, 1], strides = [1, 1]} : vector<8x6xf32> to vector<8x1xf32>
    %55 = vector.extract_strided_slice %19 {offsets = [1, 0], sizes = [1, 128], strides = [1, 1]} : vector<6x128xf32> to vector<1x128xf32>
    %56 = vector.broadcast %52 : vector<8x1xf32> to vector<8x128xf32>
    %57 = vector.broadcast %55 : vector<1x128xf32> to vector<8x128xf32>
    %58 = arith.mulf %56, %57 : vector<8x128xf32>
    %59 = vector.extract_strided_slice %20 {offsets = [1, 0], sizes = [1, 128], strides = [1, 1]} : vector<6x128xf32> to vector<1x128xf32>
    %60 = vector.broadcast %53 : vector<8x1xf32> to vector<8x128xf32>
    %61 = vector.broadcast %59 : vector<1x128xf32> to vector<8x128xf32>
    %62 = arith.mulf %60, %61 : vector<8x128xf32>
    %63 = arith.addf %58, %62 : vector<8x128xf32>
    %64 = vector.extract_strided_slice %21 {offsets = [1, 0], sizes = [1, 128], strides = [1, 1]} : vector<6x128xf32> to vector<1x128xf32>
    %65 = vector.broadcast %64 : vector<1x128xf32> to vector<8x128xf32>
    %66 = arith.addf %63, %65 : vector<8x128xf32>
    %cst_14 = arith.constant 5.000000e-01 : f32
    %67 = vector.broadcast %cst_14 : f32 to vector<8x128xf32>
    %68 = arith.mulf %66, %67 : vector<8x128xf32>
    %cst_15 = arith.constant 0.707106769 : f32
    %69 = vector.broadcast %cst_15 : f32 to vector<8x128xf32>
    %70 = arith.mulf %66, %69 : vector<8x128xf32>
    %71 = math.erf %70 : vector<8x128xf32>
    %cst_16 = arith.constant 1.000000e+00 : f32
    %72 = vector.broadcast %cst_16 : f32 to vector<8x128xf32>
    %73 = arith.addf %72, %71 : vector<8x128xf32>
    %74 = arith.mulf %68, %73 : vector<8x128xf32>
    %75 = vector.broadcast %54 : vector<8x1xf32> to vector<8x128xf32>
    %76 = arith.mulf %74, %75 : vector<8x128xf32>
    %77 = vector.extract_strided_slice %22 {offsets = [1, 0], sizes = [1, 128], strides = [1, 1]} : vector<6x128xf32> to vector<1x128xf32>
    %78 = vector.broadcast %54 : vector<8x1xf32> to vector<8x128xf32>
    %79 = vector.broadcast %77 : vector<1x128xf32> to vector<8x128xf32>
    %80 = arith.mulf %78, %79 : vector<8x128xf32>
    %81 = arith.addf %51, %80 : vector<8x128xf32>
    %82 = vector.extract_strided_slice %18 {offsets = [0, 2], sizes = [8, 1], strides = [1, 1]} : vector<8x6xf32> to vector<8x1xf32>
    %83 = vector.extract_strided_slice %17 {offsets = [0, 2], sizes = [8, 1], strides = [1, 1]} : vector<8x6xf32> to vector<8x1xf32>
    %84 = vector.extract_strided_slice %2 {offsets = [0, 2], sizes = [8, 1], strides = [1, 1]} : vector<8x6xf32> to vector<8x1xf32>
    %85 = vector.extract_strided_slice %19 {offsets = [2, 0], sizes = [1, 128], strides = [1, 1]} : vector<6x128xf32> to vector<1x128xf32>
    %86 = vector.broadcast %82 : vector<8x1xf32> to vector<8x128xf32>
    %87 = vector.broadcast %85 : vector<1x128xf32> to vector<8x128xf32>
    %88 = arith.mulf %86, %87 : vector<8x128xf32>
    %89 = vector.extract_strided_slice %20 {offsets = [2, 0], sizes = [1, 128], strides = [1, 1]} : vector<6x128xf32> to vector<1x128xf32>
    %90 = vector.broadcast %83 : vector<8x1xf32> to vector<8x128xf32>
    %91 = vector.broadcast %89 : vector<1x128xf32> to vector<8x128xf32>
    %92 = arith.mulf %90, %91 : vector<8x128xf32>
    %93 = arith.addf %88, %92 : vector<8x128xf32>
    %94 = vector.extract_strided_slice %21 {offsets = [2, 0], sizes = [1, 128], strides = [1, 1]} : vector<6x128xf32> to vector<1x128xf32>
    %95 = vector.broadcast %94 : vector<1x128xf32> to vector<8x128xf32>
    %96 = arith.addf %93, %95 : vector<8x128xf32>
    %cst_17 = arith.constant 5.000000e-01 : f32
    %97 = vector.broadcast %cst_17 : f32 to vector<8x128xf32>
    %98 = arith.mulf %96, %97 : vector<8x128xf32>
    %cst_18 = arith.constant 0.707106769 : f32
    %99 = vector.broadcast %cst_18 : f32 to vector<8x128xf32>
    %100 = arith.mulf %96, %99 : vector<8x128xf32>
    %101 = math.erf %100 : vector<8x128xf32>
    %cst_19 = arith.constant 1.000000e+00 : f32
    %102 = vector.broadcast %cst_19 : f32 to vector<8x128xf32>
    %103 = arith.addf %102, %101 : vector<8x128xf32>
    %104 = arith.mulf %98, %103 : vector<8x128xf32>
    %105 = vector.broadcast %84 : vector<8x1xf32> to vector<8x128xf32>
    %106 = arith.mulf %104, %105 : vector<8x128xf32>
    %107 = vector.extract_strided_slice %22 {offsets = [2, 0], sizes = [1, 128], strides = [1, 1]} : vector<6x128xf32> to vector<1x128xf32>
    %108 = vector.broadcast %84 : vector<8x1xf32> to vector<8x128xf32>
    %109 = vector.broadcast %107 : vector<1x128xf32> to vector<8x128xf32>
    %110 = arith.mulf %108, %109 : vector<8x128xf32>
    %111 = arith.addf %81, %110 : vector<8x128xf32>
    %112 = vector.extract_strided_slice %18 {offsets = [0, 3], sizes = [8, 1], strides = [1, 1]} : vector<8x6xf32> to vector<8x1xf32>
    %113 = vector.extract_strided_slice %17 {offsets = [0, 3], sizes = [8, 1], strides = [1, 1]} : vector<8x6xf32> to vector<8x1xf32>
    %114 = vector.extract_strided_slice %2 {offsets = [0, 3], sizes = [8, 1], strides = [1, 1]} : vector<8x6xf32> to vector<8x1xf32>
    %115 = vector.extract_strided_slice %19 {offsets = [3, 0], sizes = [1, 128], strides = [1, 1]} : vector<6x128xf32> to vector<1x128xf32>
    %116 = vector.broadcast %112 : vector<8x1xf32> to vector<8x128xf32>
    %117 = vector.broadcast %115 : vector<1x128xf32> to vector<8x128xf32>
    %118 = arith.mulf %116, %117 : vector<8x128xf32>
    %119 = vector.extract_strided_slice %20 {offsets = [3, 0], sizes = [1, 128], strides = [1, 1]} : vector<6x128xf32> to vector<1x128xf32>
    %120 = vector.broadcast %113 : vector<8x1xf32> to vector<8x128xf32>
    %121 = vector.broadcast %119 : vector<1x128xf32> to vector<8x128xf32>
    %122 = arith.mulf %120, %121 : vector<8x128xf32>
    %123 = arith.addf %118, %122 : vector<8x128xf32>
    %124 = vector.extract_strided_slice %21 {offsets = [3, 0], sizes = [1, 128], strides = [1, 1]} : vector<6x128xf32> to vector<1x128xf32>
    %125 = vector.broadcast %124 : vector<1x128xf32> to vector<8x128xf32>
    %126 = arith.addf %123, %125 : vector<8x128xf32>
    %cst_20 = arith.constant 5.000000e-01 : f32
    %127 = vector.broadcast %cst_20 : f32 to vector<8x128xf32>
    %128 = arith.mulf %126, %127 : vector<8x128xf32>
    %cst_21 = arith.constant 0.707106769 : f32
    %129 = vector.broadcast %cst_21 : f32 to vector<8x128xf32>
    %130 = arith.mulf %126, %129 : vector<8x128xf32>
    %131 = math.erf %130 : vector<8x128xf32>
    %cst_22 = arith.constant 1.000000e+00 : f32
    %132 = vector.broadcast %cst_22 : f32 to vector<8x128xf32>
    %133 = arith.addf %132, %131 : vector<8x128xf32>
    %134 = arith.mulf %128, %133 : vector<8x128xf32>
    %135 = vector.broadcast %114 : vector<8x1xf32> to vector<8x128xf32>
    %136 = arith.mulf %134, %135 : vector<8x128xf32>
    %137 = vector.extract_strided_slice %22 {offsets = [3, 0], sizes = [1, 128], strides = [1, 1]} : vector<6x128xf32> to vector<1x128xf32>
    %138 = vector.broadcast %114 : vector<8x1xf32> to vector<8x128xf32>
    %139 = vector.broadcast %137 : vector<1x128xf32> to vector<8x128xf32>
    %140 = arith.mulf %138, %139 : vector<8x128xf32>
    %141 = arith.addf %111, %140 : vector<8x128xf32>
    %142 = vector.extract_strided_slice %18 {offsets = [0, 4], sizes = [8, 1], strides = [1, 1]} : vector<8x6xf32> to vector<8x1xf32>
    %143 = vector.extract_strided_slice %17 {offsets = [0, 4], sizes = [8, 1], strides = [1, 1]} : vector<8x6xf32> to vector<8x1xf32>
    %144 = vector.extract_strided_slice %2 {offsets = [0, 4], sizes = [8, 1], strides = [1, 1]} : vector<8x6xf32> to vector<8x1xf32>
    %145 = vector.extract_strided_slice %19 {offsets = [4, 0], sizes = [1, 128], strides = [1, 1]} : vector<6x128xf32> to vector<1x128xf32>
    %146 = vector.broadcast %142 : vector<8x1xf32> to vector<8x128xf32>
    %147 = vector.broadcast %145 : vector<1x128xf32> to vector<8x128xf32>
    %148 = arith.mulf %146, %147 : vector<8x128xf32>
    %149 = vector.extract_strided_slice %20 {offsets = [4, 0], sizes = [1, 128], strides = [1, 1]} : vector<6x128xf32> to vector<1x128xf32>
    %150 = vector.broadcast %143 : vector<8x1xf32> to vector<8x128xf32>
    %151 = vector.broadcast %149 : vector<1x128xf32> to vector<8x128xf32>
    %152 = arith.mulf %150, %151 : vector<8x128xf32>
    %153 = arith.addf %148, %152 : vector<8x128xf32>
    %154 = vector.extract_strided_slice %21 {offsets = [4, 0], sizes = [1, 128], strides = [1, 1]} : vector<6x128xf32> to vector<1x128xf32>
    %155 = vector.broadcast %154 : vector<1x128xf32> to vector<8x128xf32>
    %156 = arith.addf %153, %155 : vector<8x128xf32>
    %cst_23 = arith.constant 5.000000e-01 : f32
    %157 = vector.broadcast %cst_23 : f32 to vector<8x128xf32>
    %158 = arith.mulf %156, %157 : vector<8x128xf32>
    %cst_24 = arith.constant 0.707106769 : f32
    %159 = vector.broadcast %cst_24 : f32 to vector<8x128xf32>
    %160 = arith.mulf %156, %159 : vector<8x128xf32>
    %161 = math.erf %160 : vector<8x128xf32>
    %cst_25 = arith.constant 1.000000e+00 : f32
    %162 = vector.broadcast %cst_25 : f32 to vector<8x128xf32>
    %163 = arith.addf %162, %161 : vector<8x128xf32>
    %164 = arith.mulf %158, %163 : vector<8x128xf32>
    %165 = vector.broadcast %144 : vector<8x1xf32> to vector<8x128xf32>
    %166 = arith.mulf %164, %165 : vector<8x128xf32>
    %167 = vector.extract_strided_slice %22 {offsets = [4, 0], sizes = [1, 128], strides = [1, 1]} : vector<6x128xf32> to vector<1x128xf32>
    %168 = vector.broadcast %144 : vector<8x1xf32> to vector<8x128xf32>
    %169 = vector.broadcast %167 : vector<1x128xf32> to vector<8x128xf32>
    %170 = arith.mulf %168, %169 : vector<8x128xf32>
    %171 = arith.addf %141, %170 : vector<8x128xf32>
    %172 = vector.extract_strided_slice %18 {offsets = [0, 5], sizes = [8, 1], strides = [1, 1]} : vector<8x6xf32> to vector<8x1xf32>
    %173 = vector.extract_strided_slice %17 {offsets = [0, 5], sizes = [8, 1], strides = [1, 1]} : vector<8x6xf32> to vector<8x1xf32>
    %174 = vector.extract_strided_slice %2 {offsets = [0, 5], sizes = [8, 1], strides = [1, 1]} : vector<8x6xf32> to vector<8x1xf32>
    %175 = vector.extract_strided_slice %19 {offsets = [5, 0], sizes = [1, 128], strides = [1, 1]} : vector<6x128xf32> to vector<1x128xf32>
    %176 = vector.broadcast %172 : vector<8x1xf32> to vector<8x128xf32>
    %177 = vector.broadcast %175 : vector<1x128xf32> to vector<8x128xf32>
    %178 = arith.mulf %176, %177 : vector<8x128xf32>
    %179 = vector.extract_strided_slice %20 {offsets = [5, 0], sizes = [1, 128], strides = [1, 1]} : vector<6x128xf32> to vector<1x128xf32>
    %180 = vector.broadcast %173 : vector<8x1xf32> to vector<8x128xf32>
    %181 = vector.broadcast %179 : vector<1x128xf32> to vector<8x128xf32>
    %182 = arith.mulf %180, %181 : vector<8x128xf32>
    %183 = arith.addf %178, %182 : vector<8x128xf32>
    %184 = vector.extract_strided_slice %21 {offsets = [5, 0], sizes = [1, 128], strides = [1, 1]} : vector<6x128xf32> to vector<1x128xf32>
    %185 = vector.broadcast %184 : vector<1x128xf32> to vector<8x128xf32>
    %186 = arith.addf %183, %185 : vector<8x128xf32>
    %cst_26 = arith.constant 5.000000e-01 : f32
    %187 = vector.broadcast %cst_26 : f32 to vector<8x128xf32>
    %188 = arith.mulf %186, %187 : vector<8x128xf32>
    %cst_27 = arith.constant 0.707106769 : f32
    %189 = vector.broadcast %cst_27 : f32 to vector<8x128xf32>
    %190 = arith.mulf %186, %189 : vector<8x128xf32>
    %191 = math.erf %190 : vector<8x128xf32>
    %cst_28 = arith.constant 1.000000e+00 : f32
    %192 = vector.broadcast %cst_28 : f32 to vector<8x128xf32>
    %193 = arith.addf %192, %191 : vector<8x128xf32>
    %194 = arith.mulf %188, %193 : vector<8x128xf32>
    %195 = vector.broadcast %174 : vector<8x1xf32> to vector<8x128xf32>
    %196 = arith.mulf %194, %195 : vector<8x128xf32>
    %197 = vector.extract_strided_slice %22 {offsets = [5, 0], sizes = [1, 128], strides = [1, 1]} : vector<6x128xf32> to vector<1x128xf32>
    %198 = vector.broadcast %174 : vector<8x1xf32> to vector<8x128xf32>
    %199 = vector.broadcast %197 : vector<1x128xf32> to vector<8x128xf32>
    %200 = arith.mulf %198, %199 : vector<8x128xf32>
    %201 = arith.addf %171, %200 : vector<8x128xf32>
    %202 = tpu.concatenate %47, %76, %106, %136, %166, %196 in 1 : vector<8x128xf32>, vector<8x128xf32>, vector<8x128xf32>, vector<8x128xf32>, vector<8x128xf32>, vector<8x128xf32> -> vector<8x768xf32>
    %c0_29 = arith.constant 0 : index
    %c0_30 = arith.constant 0 : index
    %203 = vector.load %arg7[%c0_29, %c0_30] : memref<768x128xf32, #tpu.memory_space<vmem>>, vector<768x128xf32>
    %cst_31 = arith.constant dense<0.000000e+00> : vector<8x128xf32>
    %204 = tpu.matmul %202, %203, %cst_31 {dimension_numbers = #tpu.dot_dimension_numbers<[1], [0], [0], [1], [0, 0, 1, 1], [], []>} : vector<8x768xf32>, vector<768x128xf32>, vector<8x128xf32> -> vector<8x128xf32>
    %205 = arith.addf %204, %201 : vector<8x128xf32>
    %c0_32 = arith.constant 0 : index
    %c0_33 = arith.constant 0 : index
    %206 = vector.load %arg8[%c0_32, %c0_33] : memref<1x128xf32, #tpu.memory_space<vmem>>, vector<1x128xf32>
    %207 = vector.broadcast %206 : vector<1x128xf32> to vector<8x128xf32>
    %208 = arith.addf %205, %207 : vector<8x128xf32>
    %cst_34 = arith.constant dense<0.000000e+00> : vector<8xf32>
    %209 = vector.multi_reduction <add>, %208, %cst_34 [1] : vector<8x128xf32> to vector<8xf32>
    %210 = vector.shape_cast %209 : vector<8xf32> to vector<8x1xf32>
    %cst_35 = arith.constant 1.280000e+02 : f32
    %211 = vector.broadcast %cst_35 : f32 to vector<8x1xf32>
    %212 = arith.divf %210, %211 : vector<8x1xf32>
    %213 = vector.broadcast %212 : vector<8x1xf32> to vector<8x128xf32>
    %214 = arith.subf %208, %213 : vector<8x128xf32>
    %215 = arith.mulf %214, %214 : vector<8x128xf32>
    %cst_36 = arith.constant dense<0.000000e+00> : vector<8xf32>
    %216 = vector.multi_reduction <add>, %215, %cst_36 [1] : vector<8x128xf32> to vector<8xf32>
    %217 = vector.shape_cast %216 : vector<8xf32> to vector<8x1xf32>
    %cst_37 = arith.constant 1.280000e+02 : f32
    %218 = vector.broadcast %cst_37 : f32 to vector<8x1xf32>
    %219 = arith.divf %217, %218 : vector<8x1xf32>
    %cst_38 = arith.constant 9.99999974E-6 : f32
    %220 = vector.broadcast %cst_38 : f32 to vector<8x1xf32>
    %221 = arith.addf %219, %220 : vector<8x1xf32>
    %222 = math.rsqrt %221 : vector<8x1xf32>
    %223 = vector.broadcast %222 : vector<8x1xf32> to vector<8x128xf32>
    %224 = arith.mulf %214, %223 : vector<8x128xf32>
    %c0_39 = arith.constant 0 : index
    %c0_40 = arith.constant 0 : index
    %225 = vector.load %arg9[%c0_39, %c0_40] : memref<1x128xf32, #tpu.memory_space<vmem>>, vector<1x128xf32>
    %226 = vector.broadcast %225 : vector<1x128xf32> to vector<8x128xf32>
    %227 = arith.mulf %224, %226 : vector<8x128xf32>
    %c0_41 = arith.constant 0 : index
    %c0_42 = arith.constant 0 : index
    %228 = vector.load %arg10[%c0_41, %c0_42] : memref<1x128xf32, #tpu.memory_space<vmem>>, vector<1x128xf32>
    %229 = vector.broadcast %228 : vector<1x128xf32> to vector<8x128xf32>
    %230 = arith.addf %227, %229 : vector<8x128xf32>
    %cst_43 = arith.constant 5.000000e-01 : f32
    %231 = vector.broadcast %cst_43 : f32 to vector<8x128xf32>
    %232 = arith.mulf %230, %231 : vector<8x128xf32>
    %cst_44 = arith.constant 0.707106769 : f32
    %233 = vector.broadcast %cst_44 : f32 to vector<8x128xf32>
    %234 = arith.mulf %230, %233 : vector<8x128xf32>
    %235 = math.erf %234 : vector<8x128xf32>
    %cst_45 = arith.constant 1.000000e+00 : f32
    %236 = vector.broadcast %cst_45 : f32 to vector<8x128xf32>
    %237 = arith.addf %236, %235 : vector<8x128xf32>
    %238 = arith.mulf %232, %237 : vector<8x128xf32>
    %c0_46 = arith.constant 0 : index
    %c0_47 = arith.constant 0 : index
    %239 = vector.load %arg11[%c0_46, %c0_47] : memref<128x64xf32, #tpu.memory_space<vmem>>, vector<128x64xf32>
    %cst_48 = arith.constant dense<0.000000e+00> : vector<8x64xf32>
    %240 = tpu.matmul %238, %239, %cst_48 {dimension_numbers = #tpu.dot_dimension_numbers<[1], [0], [0], [1], [0, 0, 1, 1], [], []>} : vector<8x128xf32>, vector<128x64xf32>, vector<8x64xf32> -> vector<8x64xf32>
    %c0_49 = arith.constant 0 : index
    %c0_50 = arith.constant 0 : index
    %241 = vector.load %arg12[%c0_49, %c0_50] : memref<1x64xf32, #tpu.memory_space<vmem>>, vector<1x64xf32>
    %242 = vector.broadcast %241 : vector<1x64xf32> to vector<8x64xf32>
    %243 = arith.addf %240, %242 : vector<8x64xf32>
    %c0_51 = arith.constant 0 : index
    %c0_52 = arith.constant 0 : index
    %244 = vector.load %arg13[%c0_51, %c0_52] : memref<8x64xf32, #tpu.memory_space<vmem>>, vector<8x64xf32>
    tpu.vector_store %arg13[%c0_51, %c0_52], %243 {strides = array<i32>} : memref<8x64xf32, #tpu.memory_space<vmem>>, vector<8x64xf32>,
    return
  }
  func.func @transform_0(%arg0: i32) -> (i32, i32) {
    %c0_i32 = arith.constant 0 : i32
    %c0_i32_0 = arith.constant 0 : i32
    return %arg0, %c0_i32 : i32, i32
  }
  func.func @transform_1(%arg0: i32) -> (i32, i32) {
    %c0_i32 = arith.constant 0 : i32
    %c0_i32_0 = arith.constant 0 : i32
    %c0_i32_1 = arith.constant 0 : i32
    return %c0_i32, %c0_i32_0 : i32, i32
  }
  func.func @transform_2(%arg0: i32) -> (i32, i32) {
    %c0_i32 = arith.constant 0 : i32
    %c0_i32_0 = arith.constant 0 : i32
    %c0_i32_1 = arith.constant 0 : i32
    return %c0_i32, %c0_i32_0 : i32, i32
  }
  func.func @transform_3(%arg0: i32) -> (i32, i32) {
    %c0_i32 = arith.constant 0 : i32
    %c0_i32_0 = arith.constant 0 : i32
    %c0_i32_1 = arith.constant 0 : i32
    return %c0_i32, %c0_i32_0 : i32, i32
  }
  func.func @transform_4(%arg0: i32) -> (i32, i32) {
    %c0_i32 = arith.constant 0 : i32
    %c0_i32_0 = arith.constant 0 : i32
    %c0_i32_1 = arith.constant 0 : i32
    return %c0_i32, %c0_i32_0 : i32, i32
  }
  func.func @transform_5(%arg0: i32) -> (i32, i32) {
    %c0_i32 = arith.constant 0 : i32
    %c0_i32_0 = arith.constant 0 : i32
    %c0_i32_1 = arith.constant 0 : i32
    return %c0_i32, %c0_i32_0 : i32, i32
  }
  func.func @transform_6(%arg0: i32) -> (i32, i32) {
    %c0_i32 = arith.constant 0 : i32
    %c0_i32_0 = arith.constant 0 : i32
    %c0_i32_1 = arith.constant 0 : i32
    return %c0_i32, %c0_i32_0 : i32, i32
  }
  func.func @transform_7(%arg0: i32) -> (i32, i32) {
    %c0_i32 = arith.constant 0 : i32
    %c0_i32_0 = arith.constant 0 : i32
    %c0_i32_1 = arith.constant 0 : i32
    return %c0_i32, %c0_i32_0 : i32, i32
  }
  func.func @transform_8(%arg0: i32) -> (i32, i32) {
    %c0_i32 = arith.constant 0 : i32
    %c0_i32_0 = arith.constant 0 : i32
    %c0_i32_1 = arith.constant 0 : i32
    return %c0_i32, %c0_i32_0 : i32, i32
  }
  func.func @transform_9(%arg0: i32) -> (i32, i32) {
    %c0_i32 = arith.constant 0 : i32
    %c0_i32_0 = arith.constant 0 : i32
    %c0_i32_1 = arith.constant 0 : i32
    return %c0_i32, %c0_i32_0 : i32, i32
  }
  func.func @transform_10(%arg0: i32) -> (i32, i32) {
    %c0_i32 = arith.constant 0 : i32
    %c0_i32_0 = arith.constant 0 : i32
    %c0_i32_1 = arith.constant 0 : i32
    return %c0_i32, %c0_i32_0 : i32, i32
  }
  func.func @transform_11(%arg0: i32) -> (i32, i32) {
    %c0_i32 = arith.constant 0 : i32
    %c0_i32_0 = arith.constant 0 : i32
    %c0_i32_1 = arith.constant 0 : i32
    return %c0_i32, %c0_i32_0 : i32, i32
  }
  func.func @transform_12(%arg0: i32) -> (i32, i32) {
    %c0_i32 = arith.constant 0 : i32
    %c0_i32_0 = arith.constant 0 : i32
    return %arg0, %c0_i32 : i32, i32
  }
}

</mosaic_0001>

<bundles_post_ra>
// kernel: tpu_custom_call.1
= control target key start
LH: loop header
LB: loop body
LE: loop exit
PB: predicated region body
PF: predicated region fallthrough
CT: control target
= control target key end

     0   :  { %17 = vsyncpa [#allocation3], 0  ;;  %s1472_s0 = inlined_call_operand.vmem [shape: f32[8,12], index: 0, kind: input, shape index: {}]   ;;  %s1473_s1 = inlined_call_operand.vmem [shape: f32[3,6], index: 1, kind: input, shape index: {}]   ;;  %s1474_s2 = inlined_call_operand.vmem [shape: f32[6,128], index: 2, kind: input, shape index: {}]   ;;  %s1475_s3 = inlined_call_operand.vmem [shape: f32[6,128], index: 3, kind: input, shape index: {}]   ;;  %s1476_s4 = inlined_call_operand.vmem [shape: f32[6,128], index: 4, kind: input, shape index: {}]   ;;  %s1477_s5 = inlined_call_operand.vmem [shape: f32[6,128], index: 5, kind: input, shape index: {}]   ;;  %s1478_s6 = inlined_call_operand.hbm [shape: f32[768,128], index: 6, kind: input, shape index: {}]   ;;  %s1479_s7 = inlined_call_operand.vmem [shape: f32[1,128], index: 7, kind: input, shape index: {}]   ;;  %s1480_s8 = inlined_call_operand.vmem [shape: f32[1,128], index: 8, kind: input, shape index: {}]   ;;  %s1481_s9 = inlined_call_operand.vmem [shape: f32[1,128], index: 9, kind: input, shape index: {}]   ;;  %s1482_s10 = inlined_call_operand.vmem [shape: f32[128,64], index: 10, kind: input, shape index: {}]   ;;  %s1483_s11 = inlined_call_operand.vmem [shape: f32[1,64], index: 11, kind: input, shape index: {}]   ;;  %s1484_s12 = inlined_call_operand.hbm [shape: f32[8,64], index: 12, kind: output, shape index: {}]  }
   0x1   :  { %18 = vsyncpa [#allocation4], 0  ;;  %s1163_s21 = smov [#allocation2]   ;;  %s1115_s25 = scalar_lea.hbm %s1478_s6, 12288 }
   0x2   :  { %s36_s22 = sshll.u32 %s1163_s21, 4  ;;  %p1116_p0 = scmp.ne.s32.totalorder %s1478_s6, %s1115_s25  ;;  %s37_s22 = int_to_ptr.vmem [resolvable:$true] %s36_s22 }
   0x3   :  { %p1119_p1 = scmp.lt.u32.totalorder %s1115_s25, %s1478_s6 }
   0x5   :  { %p1121_p2 = pnand %p1119_p1, %p1116_p0 }
   0x7   :  { %1124 = shalt.err (!%p1121_p2)
}
   0x8   :  { %s1125_s30 = scalar_lea.vmem %s37_s22, 12288  ;;  %p1130_p4 = scmp.lt.s32.totalorder %s37_s22, %s37_s22 }
   0x9   :  { %p1126_p3 = scmp.ne.s32.totalorder %s37_s22, %s1125_s30  ;;  %p1131_p5 = scmp.lt.s32.totalorder %s1125_s30, %s1125_s30 }
   0xb   :  { %p1132_p6 = por %p1131_p5, %p1130_p4 }
   0xd   :  { %p1133_p7 = pnand %p1132_p6, %p1126_p3 }
   0xf   :  { %1136 = shalt.err (!%p1133_p7)
}
  0x10   :  { %s1164_s13 = smov 128   ;;  %s1165_s14 = smov 8  }
  0x11   :  { %42 = dma.hbm_to_vmem [thread:$0]  %s1478_s6, 12288, %s37_s22, [#allocation3], %s1164_s13, %s1164_s13, %s1165_s14  }
  0x12   :  { %1159 = dma.done.wait [#allocation3], 12288  }
  0x13   :  { %1160 = vsyncadd [#allocation3], 4294955008  ;;  %v59_v0 = vlaneseq  ;;  %v1166_v1 = vmov 1   ;;  %v1167_v2 = vmov 0   ;;  %v1273_v7 = vld [vmem:[%s1472_s0] sm:$0xff]  ;;  %v341_v13 = vld [vmem:[#allocation2 + $0x88] sm:$0xff] }
  0x14   :  { %1081 = vset.pattern.permute.xlu0 %v1166_v1  ;;  %1082 = vset.pattern.permute.xlu1 %v1167_v2  ;;  %v57_v8 = vld [vmem:[%s1473_s1] sm:$0x7]  ;;  %v58_v10 = vmul.f32 %v1273_v7, %v1273_v7  ;;  %v325_v15 = vld [vmem:[#allocation2 + $0x8] sm:$0xff]  ;;  %v342_v25 = vld [vmem:[#allocation2 + $0x90] sm:$0xff]  ;;  %v1168_v40 = vmov 7   ;;  %v1169_v45 = vmov 6  }
  0x15   :  { %v1259_v3 = vshrl.u32 %v59_v0, 7  ;;  %v340_v9 = vld [vmem:[#allocation2 + $0x80] sm:$0xff]  ;;  %v343_v26 = vld [vmem:[#allocation2 + $0x98] sm:$0xff]  ;;  %v326_v29 = vld [vmem:[#allocation2 + $0x10] sm:$0xff]  ;;  %v1170_v51 = vmov 3   ;;  %v1171_v53 = vmov 2  }
  0x16   :  { %v324_v14 = vld [vmem:[#allocation2] sm:$0xff]  ;;  %v942_v16 = vpack.c.bf16 %v341_v13, %v340_v9  ;;  %v946_v28 = vpack.c.bf16 %v343_v26, %v342_v25  ;;  %v327_v30 = vld [vmem:[#allocation2 + $0x18] sm:$0xff]  ;;  %v345_v33 = vld [vmem:[#allocation2 + $0xa8] sm:$0xff]  ;;  %v1172_v60 = vmov 5   ;;  %v1173_v13 = vmov 4   ;;  %s1181_s16 = smov [#allocation5]  }
  0x17   :  { %v1262_v4 = vsub.s32 0, %v1259_v3  ;;  %v1265_v5 = vsub.s32 1, %v1259_v3  ;;  %v1268_v6 = vsub.s32 2, %v1259_v3  ;;  %v944_v17 = vpack.c.bf16 %v325_v15, %v324_v14  ;;  %v344_v32 = vld [vmem:[#allocation2 + $0xa0] sm:$0xff]  ;;  %v329_v36 = vld [vmem:[#allocation2 + $0x28] sm:$0xff]  ;;  %v346_v38 = vld [vmem:[#allocation2 + $0xb0] sm:$0xff] }
  0x18   :  { %943 = vmatprep.subr.bf16.mxu0 %v942_v16  ;;  %v948_v31 = vpack.c.bf16 %v327_v30, %v326_v29  ;;  %v950_v34 = vpack.c.bf16 %v345_v33, %v344_v32  ;;  %v328_v35 = vld [vmem:[#allocation2 + $0x20] sm:$0xff]  ;;  %v347_v39 = vld [vmem:[#allocation2 + $0xb8] sm:$0xff]  ;;  %v330_v42 = vld [vmem:[#allocation2 + $0x30] sm:$0xff]  ;;  %vm1179_vm0 = vmmov 0   ;;  %vm764_vm1 = vcmask 523264  }
  0x19   :  { %v62_v11 = vrot.slane %v57_v8, %v1262_v4  ;;  %v67_v12 = vrot.slane %v57_v8, %v1265_v5  ;;  %v73_v20 = vrot.slane %v57_v8, %v1268_v6  ;;  %945 = vmatpush3.bf16.msra.mxu0 %v944_v17  ;;  %v952_v37 = vpack.c.bf16 %v329_v36, %v328_v35  ;;  %v331_v43 = vld [vmem:[#allocation2 + $0x38] sm:$0xff]  ;;  %v348_v46 = vld [vmem:[#allocation2 + $0xc0] sm:$0xff]  ;;  %v349_v47 = vld [vmem:[#allocation2 + $0xc8] sm:$0xff] }
  0x1a   :  { %947 = vmatprep.subr.bf16.mxu0 %v946_v28  ;;  %v954_v41 = vpack.c.bf16 %v347_v39, %v346_v38  ;;  %v956_v44 = vpack.c.bf16 %v331_v43, %v330_v42  ;;  %v958_v48 = vpack.c.bf16 %v349_v47, %v348_v46  ;;  %v332_v49 = vld [vmem:[#allocation2 + $0x40] sm:$0xff]  ;;  %v333_v50 = vld [vmem:[#allocation2 + $0x48] sm:$0xff]  ;;  %v350_v54 = vld [vmem:[#allocation2 + $0xd0] sm:$0xff] }
  0x1b   :  { %v63_v18 = vmul.f32 %v62_v11, %v58_v10  ;;  %v68_v19 = vmul.f32 %v67_v12, %v1273_v7  ;;  %v960_v52 = vpack.c.bf16 %v333_v50, %v332_v49  ;;  %v351_v55 = vld [vmem:[#allocation2 + $0xd8] sm:$0xff]  ;;  %v334_v57 = vld [vmem:[#allocation2 + $0x50] sm:$0xff]  ;;  %v352_v61 = vld [vmem:[#allocation2 + $0xe0] sm:$0xff]  ;;  %v1175_v49 = vmov 9  }
  0x1c   :  { %v962_v56 = vpack.c.bf16 %v351_v55, %v350_v54  ;;  %v335_v58 = vld [vmem:[#allocation2 + $0x58] sm:$0xff]  ;;  %v353_v62 = vld [vmem:[#allocation2 + $0xe8] sm:$0xff]  ;;  %v336_v0 = vld [vmem:[#allocation2 + $0x60] sm:$0xff] }
  0x1d   :  { %v69_v21 = vadd.f32 %v68_v19, %v63_v18  ;;  %949 = vmatpush3.bf16.msra.mxu0 %v948_v31  ;;  %v964_v59 = vpack.c.bf16 %v335_v58, %v334_v57  ;;  %v966_v63 = vpack.c.bf16 %v353_v62, %v352_v61  ;;  %v337_v1 = vld [vmem:[#allocation2 + $0x68] sm:$0xff]  ;;  %v372_v8 = vld [vmem:[#allocation2 + $0x180] sm:$0xff]  ;;  %v354_v15 = vld [vmem:[#allocation2 + $0xf0] sm:$0xff] }
  0x1e   :  { %951 = vmatprep.subr.bf16.mxu0 %v950_v34  ;;  %v968_v2 = vpack.c.bf16 %v337_v1, %v336_v0  ;;  %v373_v9 = vld [vmem:[#allocation2 + $0x188] sm:$0xff]  ;;  %v356_v11 = vld [vmem:[#allocation2 + $0x100] sm:$0xff]  ;;  %v355_v16 = vld [vmem:[#allocation2 + $0xf8] sm:$0xff] }
  0x1f   :  { %v74_v22 = vadd.f32 %v73_v20, %v69_v21  ;;  %v974_v10 = vpack.c.bf16 %v373_v9, %v372_v8  ;;  %v357_v12 = vld [vmem:[#allocation2 + $0x108] sm:$0xff]  ;;  %v970_v17 = vpack.c.bf16 %v355_v16, %v354_v15  ;;  %v338_v18 = vld [vmem:[#allocation2 + $0x70] sm:$0xff]  ;;  %v339_v19 = vld [vmem:[#allocation2 + $0x78] sm:$0xff] }
  0x20   :  { %v976_v14 = vpack.c.bf16 %v357_v12, %v356_v11  ;;  %v972_v20 = vpack.c.bf16 %v339_v19, %v338_v18  ;;  %v374_v21 = vld [vmem:[#allocation2 + $0x190] sm:$0xff]  ;;  %v359_v26 = vld [vmem:[#allocation2 + $0x118] sm:$0xff]  ;;  %v404_v29 = vld [vmem:[#allocation2 + $0x280] sm:$0xff] }
  0x21   :  { %v75_v23 = vadd.f32 1e-05, %v74_v22  ;;  %953 = vmatpush3.bf16.msra.mxu0 %v952_v37  ;;  %975 = vmatprep.subr.bf16.mxu1 %v974_v10  ;;  %v375_v22 = vld [vmem:[#allocation2 + $0x198] sm:$0xff]  ;;  %v358_v25 = vld [vmem:[#allocation2 + $0x110] sm:$0xff]  ;;  %v405_v30 = vld [vmem:[#allocation2 + $0x288] sm:$0xff] }
  0x22   :  { %955 = vmatprep.subr.bf16.mxu0 %v954_v41  ;;  %977 = vmatpush3.bf16.msra.mxu1 %v976_v14  ;;  %v980_v28 = vpack.c.bf16 %v359_v26, %v358_v25  ;;  %v1006_v31 = vpack.c.bf16 %v405_v30, %v404_v29  ;;  %v376_v32 = vld [vmem:[#allocation2 + $0x1a0] sm:$0xff]  ;;  %v377_v33 = vld [vmem:[#allocation2 + $0x1a8] sm:$0xff]  ;;  %v378_v38 = vld [vmem:[#allocation2 + $0x1b0] sm:$0xff] }
  0x23   :  { %1097 = vrsqrt.f32 %v75_v23  ;;  %v978_v23 = vpack.c.bf16 %v375_v22, %v374_v21  ;;  %v982_v34 = vpack.c.bf16 %v377_v33, %v376_v32  ;;  %v360_v35 = vld [vmem:[#allocation2 + $0x120] sm:$0xff]  ;;  %v361_v36 = vld [vmem:[#allocation2 + $0x128] sm:$0xff]  ;;  %v379_v39 = vld [vmem:[#allocation2 + $0x1b8] sm:$0xff] }
  0x24   :  { %v984_v37 = vpack.c.bf16 %v361_v36, %v360_v35  ;;  %v362_v41 = vld [vmem:[#allocation2 + $0x130] sm:$0xff]  ;;  %v363_v42 = vld [vmem:[#allocation2 + $0x138] sm:$0xff]  ;;  %v364_v47 = vld [vmem:[#allocation2 + $0x140] sm:$0xff] }
  0x25   :  { %957 = vmatpush3.bf16.msra.mxu0 %v956_v44  ;;  %979 = vmatprep.subr.bf16.mxu1 %v978_v23  ;;  %v988_v43 = vpack.c.bf16 %v363_v42, %v362_v41  ;;  %v380_v44 = vld [vmem:[#allocation2 + $0x1c0] sm:$0xff]  ;;  %v366_v54 = vld [vmem:[#allocation2 + $0x150] sm:$0xff]  ;;  %v385_v58 = vld [vmem:[#allocation2 + $0x1e8] sm:$0xff] }
  0x26   :  { %959 = vmatprep.subr.bf16.mxu0 %v958_v48  ;;  %981 = vmatpush3.bf16.msra.mxu1 %v980_v28  ;;  %v365_v48 = vld [vmem:[#allocation2 + $0x148] sm:$0xff]  ;;  %v384_v57 = vld [vmem:[#allocation2 + $0x1e0] sm:$0xff]  ;;  %v386_v0 = vld [vmem:[#allocation2 + $0x1f0] sm:$0xff] }
  0x27   :  { %983 = vmatprep.subr.bf16.mxu1 %v982_v34  ;;  %v992_v50 = vpack.c.bf16 %v365_v48, %v364_v47  ;;  %v369_v61 = vld [vmem:[#allocation2 + $0x168] sm:$0xff]  ;;  %v387_v1 = vld [vmem:[#allocation2 + $0x1f8] sm:$0xff]  ;;  %v370_v8 = vld [vmem:[#allocation2 + $0x170] sm:$0xff] }
  0x28   :  { %v371_v9 = vld [vmem:[#allocation2 + $0x178] sm:$0xff]  ;;  %v1311_v11 = vld [vmem:[%s1475_s3] sm:$0x3f] }
  0x29   :  { %961 = vmatpush3.bf16.msra.mxu0 %v960_v52  ;;  %v383_v52 = vld [vmem:[#allocation2 + $0x1d8] sm:$0xff]  ;;  %v1004_v10 = vpack.c.bf16 %v371_v9, %v370_v8  ;;  %v1325_v16 = vld [vmem:[%s1476_s4] sm:$0x3f]  ;;  %v100_v18 = vrot.slane %v1311_v11, %v1262_v4  ;;  %v406_v9 = vld [vmem:[#allocation2 + $0x290] sm:$0xff] }
  0x2a   :  { %963 = vmatprep.subr.bf16.mxu0 %v962_v56  ;;  %985 = vmatpush3.bf16.msra.mxu1 %v984_v37  ;;  %v1176_v56 = vmov 8   ;;  %v1334_v19 = vld [vmem:[%s1477_s5] sm:$0x3f]  ;;  %v146_v22 = vrot.slane %v1325_v16, %v1265_v5  ;;  %v106_v30 = vrot.slane %v1325_v16, %v1262_v4 }
  0x2b   :  { %v161_v26 = vrot.slane %v1334_v19, %v1265_v5 }
  0x2d   :  { %v1284_v24 = vpop.eup %1097  ;;  %965 = vmatpush3.bf16.msra.mxu0 %v964_v59  ;;  %v998_v59 = vpack.c.bf16 %v385_v58, %v384_v57 }
  0x2e   :  { %134 = vperm.xlu0 %1081, %v1284_v24   ;;  %v1289_v27 = vmul.f32 %v1284_v24, %v1273_v7  ;;  %967 = vmatprep.subr.bf16.mxu0 %v966_v63  ;;  %v1177_v63 = vmov 10  }
  0x30   :  { %84 = vperm.xlu1 %1082, %v1289_v27  }
  0x31   :  { %969 = vmatpush3.bf16.msra.mxu0 %v968_v2  ;;  %v1002_v2 = vpack.c.bf16 %v387_v1, %v386_v0  ;;  %v389_v0 = vld [vmem:[#allocation2 + $0x208] sm:$0xff]  ;;  %v180_v1 = vrot.slane %v1311_v11, %v1268_v6 }
  0x32   :  { %125 = vperm.xlu0 %1081, %v1289_v27   ;;  %971 = vmatprep.subr.bf16.mxu0 %v970_v17 }
  0x34   :  { %94 = vperm.xlu1 %1082, %v1284_v24  }
  0x35   :  { %973 = vmatpush3.bf16.msra.mxu0 %v972_v20 }
  0x36   :  { %1083 = vset.pattern.permute.xlu0 %v1168_v40  ;;  %1007 = vmatprep.subr.bf16.mxu0 %v1006_v31  ;;  %v986_v40 = vpack.c.bf16 %v379_v39, %v378_v38  ;;  %v122_v31 = vrot.slane %v1334_v19, %v1262_v4 }
  0x37   :  { %154 = vperm.xlu0 %1083, %v1273_v7  }
  0x38   :  { %1084 = vset.pattern.permute.xlu1 %v1169_v45  ;;  %987 = vmatprep.subr.bf16.mxu1 %v986_v40  ;;  %v381_v45 = vld [vmem:[#allocation2 + $0x1c8] sm:$0xff]  ;;  %v1345_v40 = vsub.s32 5, %v1259_v3 }
  0x39   :  { %115 = vperm.xlu1 %1084, %v1273_v7   ;;  %989 = vmatpush3.bf16.msra.mxu1 %v988_v43  ;;  %v990_v46 = vpack.c.bf16 %v381_v45, %v380_v44  ;;  %v1352_v44 = vsub.s32 3, %v1259_v3 }
  0x3a   :  { %v300_v45 = vrot.slane %v1311_v11, %v1345_v40 }
  0x3b   :  { %1085 = vset.pattern.permute.xlu0 %v1170_v51  ;;  %991 = vmatprep.subr.bf16.mxu1 %v990_v46  ;;  %v220_v48 = vrot.slane %v1311_v11, %v1352_v44 }
  0x3c   :  { %214 = vperm.xlu0 %1085, %v1284_v24  }
  0x3d   :  { %1086 = vset.pattern.permute.xlu1 %v1171_v53  ;;  %993 = vmatpush3.bf16.msra.mxu1 %v992_v50 }
  0x3e   :  { %174 = vperm.xlu1 %1086, %v1284_v24  }
  0x40   :  { %1090 = vset.pattern.permute.xlu0 %v1172_v60 }
  0x41   :  { %285 = vperm.xlu0 %1090, %v1289_v27  }
  0x42   :  { %1087 = vset.pattern.permute.xlu1 %v1172_v60  ;;  %v368_v60 = vld [vmem:[#allocation2 + $0x160] sm:$0xff] }
  0x43   :  { %294 = vperm.xlu1 %1087, %v1284_v24   ;;  %v1000_v62 = vpack.c.bf16 %v369_v61, %v368_v60 }
  0x45   :  { %1092 = vset.pattern.permute.xlu0 %v1173_v13 }
  0x46   :  { %254 = vperm.xlu0 %1092, %v1284_v24   ;;  %v1174_v24 = vmov 11  }
  0x47   :  { %1088 = vset.pattern.permute.xlu1 %v1170_v51  ;;  %v382_v51 = vld [vmem:[#allocation2 + $0x1d0] sm:$0xff] }
  0x48   :  { %205 = vperm.xlu1 %1088, %v1289_v27  }
  0x4a   :  { %1095 = vset.pattern.permute.xlu0 %v1174_v24 }
  0x4b   :  { %314 = vperm.xlu0 %1095, %v1273_v7  }
  0x4c   :  { %1089 = vset.pattern.permute.xlu1 %v1171_v53  ;;  %v994_v53 = vpack.c.bf16 %v383_v52, %v382_v51  ;;  %v306_v51 = vrot.slane %v1325_v16, %v1345_v40 }
  0x4d   :  { %165 = vperm.xlu1 %1089, %v1289_v27  }
  0x4e   :  { %995 = vmatprep.subr.bf16.mxu1 %v994_v53 }
  0x51   :  { %1091 = vset.pattern.permute.xlu1 %v1173_v13  ;;  %v1316_v13 = vld [vmem:[%s1474_s2] sm:$0x3f] }
  0x52   :  { %245 = vperm.xlu1 %1091, %v1289_v27   ;;  %v367_v27 = vld [vmem:[#allocation2 + $0x158] sm:$0xff]  ;;  %v131_v14 = vrot.slane %v1316_v13, %v1265_v5  ;;  %v90_v17 = vrot.slane %v1316_v13, %v1262_v4  ;;  %v291_v4 = vrot.slane %v1316_v13, %v1345_v40  ;;  %v211_v53 = vrot.slane %v1316_v13, %v1352_v44 }
  0x53   :  { %v996_v55 = vpack.c.bf16 %v367_v27, %v366_v54 }
  0x55   :  { %997 = vmatpush3.bf16.msra.mxu1 %v996_v55 }
  0x56   :  { %1093 = vset.pattern.permute.xlu1 %v1175_v49  ;;  %999 = vmatprep.subr.bf16.mxu1 %v998_v59 }
  0x57   :  { %234 = vperm.xlu1 %1093, %v1273_v7  }
  0x59   :  { %1001 = vmatpush3.bf16.msra.mxu1 %v1000_v62 }
  0x5a   :  { %1003 = vmatprep.subr.bf16.mxu1 %v1002_v2  ;;  %v226_v2 = vrot.slane %v1325_v16, %v1352_v44 }
  0x5b   :  { %1094 = vset.pattern.permute.xlu1 %v1176_v56 }
  0x5c   :  { %194 = vperm.xlu1 %1094, %v1273_v7  }
  0x5d   :  { %1005 = vmatpush3.bf16.msra.mxu1 %v1004_v10  ;;  %v407_v10 = vld [vmem:[#allocation2 + $0x298] sm:$0xff] }
  0x60   :  { %1096 = vset.pattern.permute.xlu1 %v1177_v63  ;;  %v388_v63 = vld [vmem:[#allocation2 + $0x200] sm:$0xff] }
  0x61   :  { %274 = vperm.xlu1 %1096, %v1273_v7   ;;  %v140_v7 = vrot.slane %v1311_v11, %v1265_v5 }
  0xad   :  { %v135_v12 = vpop.permute.xlu0 %134 }
  0xae   :  { %v141_v21 = vmul.f32 %v140_v7, %v135_v12  ;;  %v1369_v12 = vsub.s32 4, %v1259_v3 }
  0xaf   :  { %v85_v15 = vpop.permute.xlu1 %84 }
  0xb0   :  { %v91_v28 = vmul.f32 %v90_v17, %v85_v15  ;;  %v171_v17 = vrot.slane %v1316_v13, %v1268_v6  ;;  %v260_v3 = vrot.slane %v1311_v11, %v1369_v12  ;;  %v392_v11 = vld [vmem:[#allocation2 + $0x220] sm:$0xff] }
  0xb1   :  { %v126_v20 = vpop.permute.xlu0 %125 }
  0xb2   :  { %v132_v23 = vmul.f32 %v131_v14, %v126_v20  ;;  %v1008_v20 = vpack.c.bf16 %v389_v0, %v388_v63  ;;  %v396_v63 = vld [vmem:[#allocation2 + $0x240] sm:$0xff]  ;;  %v397_v0 = vld [vmem:[#allocation2 + $0x248] sm:$0xff] }
  0xb3   :  { %v95_v25 = vpop.permute.xlu1 %94 }
  0xb4   :  { %v142_v29 = vadd.f32 %v141_v21, %v132_v23  ;;  %v101_v24 = vmul.f32 %v100_v18, %v95_v25  ;;  %v390_v23 = vld [vmem:[#allocation2 + $0x210] sm:$0xff]  ;;  %v391_v25 = vld [vmem:[#allocation2 + $0x218] sm:$0xff] }
  0xb6   :  { %v147_v32 = vadd.f32 %v146_v22, %v142_v29  ;;  %v102_v33 = vadd.f32 %v101_v24, %v91_v28  ;;  %v155_v34 = vpop.permute.xlu0 %154  ;;  %v1010_v22 = vpack.c.bf16 %v407_v10, %v406_v9  ;;  %v408_v29 = vld [vmem:[#allocation2 + $0x2a0] sm:$0xff]  ;;  %v414_v9 = vld [vmem:[#allocation2 + $0x2d0] sm:$0xff]  ;;  %v415_v10 = vld [vmem:[#allocation2 + $0x2d8] sm:$0xff] }
  0xb7   :  { %v162_v35 = vmul.f32 %v161_v26, %v155_v34 }
  0xb8   :  { %v149_v36 = vmul.f32 0.70710677, %v147_v32  ;;  %v107_v37 = vadd.f32 %v106_v30, %v102_v33  ;;  %v116_v38 = vpop.permute.xlu1 %115  ;;  %v148_v27 = vmul.f32 0.5, %v147_v32  ;;  %v409_v30 = vld [vmem:[#allocation2 + $0x2a8] sm:$0xff] }
  0xb9   :  { %v123_v39 = vmul.f32 %v122_v31, %v116_v38  ;;  %v186_v31 = vrot.slane %v1325_v16, %v1268_v6 }
  0xba   :  { %v109_v5 = vmul.f32 0.70710677, %v107_v37  ;;  %1099 = verf.f32 %v149_v36  ;;  %v108_v58 = vmul.f32 0.5, %v107_v37  ;;  %v1012_v36 = vpack.c.bf16 %v391_v25, %v390_v23  ;;  %v416_v25 = vld [vmem:[#allocation2 + $0x2e0] sm:$0xff] }
  0xbb   :  { %v1347_v41 = vadd.f32 %v162_v35, %v123_v39  ;;  %v215_v42 = vpop.permute.xlu0 %214  ;;  %v251_v35 = vrot.slane %v1316_v13, %v1369_v12  ;;  %v393_v39 = vld [vmem:[#allocation2 + $0x228] sm:$0xff]  ;;  %v241_v13 = vrot.slane %v1334_v19, %v1352_v44 }
  0xbc   :  { %1101 = verf.f32 %v109_v5  ;;  %v221_v57 = vmul.f32 %v220_v48, %v215_v42  ;;  %v410_v42 = vld [vmem:[#allocation2 + $0x2b0] sm:$0xff]  ;;  %v1016_v48 = vpack.c.bf16 %v393_v39, %v392_v11 }
  0xbd   :  { %v175_v43 = vpop.permute.xlu1 %174  ;;  %v418_v11 = vld [vmem:[#allocation2 + $0x2f0] sm:$0xff] }
  0xbe   :  { %v181_v24 = vmul.f32 %v180_v1, %v175_v43  ;;  %v411_v43 = vld [vmem:[#allocation2 + $0x2b8] sm:$0xff] }
  0xc0   :  { %v286_v46 = vpop.permute.xlu0 %285 }
  0xc1   :  { %v292_v47 = vmul.f32 %v291_v4, %v286_v46 }
  0xc2   :  { %v295_v49 = vpop.permute.xlu1 %294 }
  0xc3   :  { %v301_v50 = vmul.f32 %v300_v45, %v295_v49 }
  0xc4   :  { %v1100_v52 = vpop.eup %1099 }
  0xc5   :  { %v302_v54 = vadd.f32 %v301_v50, %v292_v47  ;;  %v151_v55 = vadd.f32 1.0, %v1100_v52  ;;  %v255_v33 = vpop.permute.xlu0 %254  ;;  %v266_v47 = vrot.slane %v1325_v16, %v1369_v12  ;;  %v1018_v50 = vpack.c.bf16 %v411_v43, %v410_v42  ;;  %v395_v52 = vld [vmem:[#allocation2 + $0x238] sm:$0xff]  ;;  %v402_v43 = vld [vmem:[#allocation2 + $0x270] sm:$0xff] }
  0xc6   :  { %v1102_v56 = vpop.eup %1101  ;;  %v261_v5 = vmul.f32 %v260_v3, %v255_v33  ;;  %v281_v3 = vrot.slane %v1334_v19, %v1369_v12  ;;  %v400_v33 = vld [vmem:[#allocation2 + $0x260] sm:$0xff] }
  0xc7   :  { %v111_v59 = vadd.f32 1.0, %v1102_v56  ;;  %v1362_v60 = vadd.f32 %v306_v51, %v302_v54  ;;  %v206_v61 = vpop.permute.xlu1 %205  ;;  %v152_v62 = vmul.f32 %v151_v55, %v148_v27  ;;  %v394_v51 = vld [vmem:[#allocation2 + $0x230] sm:$0xff]  ;;  %v412_v54 = vld [vmem:[#allocation2 + $0x2c0] sm:$0xff]  ;;  %v413_v27 = vld [vmem:[#allocation2 + $0x2c8] sm:$0xff] }
  0xc8   :  { %v212_v8 = vmul.f32 %v211_v53, %v206_v61  ;;  %v1022_v44 = vpack.c.bf16 %v413_v27, %v412_v54 }
  0xc9   :  { %v112_v7 = vmul.f32 %v111_v59, %v108_v58  ;;  %v309_v14 = vmul.f32 0.70710677, %v1362_v60  ;;  %v157_v15 = vmul.f32 %v155_v34, %v152_v62  ;;  %v1020_v58 = vpack.c.bf16 %v395_v52, %v394_v51 }
  0xca   :  { %v222_v18 = vadd.f32 %v221_v57, %v212_v8  ;;  %v308_v16 = vmul.f32 0.5, %v1362_v60  ;;  %v315_v62 = vpop.permute.xlu0 %314  ;;  %v201_v8 = vrot.slane %v1334_v19, %v1268_v6  ;;  %v1024_v60 = vpack.c.bf16 %v397_v0, %v396_v63 }
  0xcb   :  { %v118_v21 = vmul.f32 %v116_v38, %v112_v7  ;;  %1103 = verf.f32 %v309_v14  ;;  %484 = vmatprep.mubr.f32.mxu0 %v157_v15  ;;  %v1014_v38 = vpack.c.bf16 %v409_v30, %v408_v29  ;;  %v321_v6 = vrot.slane %v1334_v19, %v1345_v40  ;;  %v419_v40 = vld [vmem:[#allocation2 + $0x2f8] sm:$0xff] }
  0xcc   :  { %v1374_v26 = vadd.f32 %v226_v2, %v222_v18  ;;  %v166_v28 = vpop.permute.xlu1 %165  ;;  %v1034_v42 = vpack.c.bf16 %v419_v40, %v418_v11 }
  0xcd   :  { %v172_v32 = vmul.f32 %v171_v17, %v166_v28  ;;  %485 = vmatmul.mubr.f32.vlgmr.msra.gmra.mrb[0].mxu0 %v118_v21  ;;  %v1026_v17 = vpack.c.bf16 %v415_v10, %v414_v9  ;;  %v398_v21 = vld [vmem:[#allocation2 + $0x250] sm:$0xff]  ;;  %v417_v28 = vld [vmem:[#allocation2 + $0x2e8] sm:$0xff]  ;;  %v322_v39 = vmul.f32 %v321_v6, %v315_v62  ;;  %v671_v9 = vld [vmem:[%s1482_s10] sm:$0xff] }
  0xce   :  { %v229_v34 = vmul.f32 0.70710677, %v1374_v26  ;;  %1009 = vmatpush3.bf16.msra.mxu0 %v1008_v20  ;;  %v228_v18 = vmul.f32 0.5, %v1374_v26  ;;  %v672_v10 = vld [vmem:[%s1482_s10 + $0x8] sm:$0xff] }
  0xcf   :  { %v182_v37 = vadd.f32 %v181_v24, %v172_v32  ;;  %1011 = vmatprep.subr.bf16.mxu0 %v1010_v22  ;;  %v399_v22 = vld [vmem:[#allocation2 + $0x258] sm:$0xff]  ;;  %v1030_v32 = vpack.c.bf16 %v417_v28, %v416_v25  ;;  %v679_v28 = vld [vmem:[%s1482_s10 + $0x40] sm:$0xff]  ;;  %v680_v6 = vld [vmem:[%s1482_s10 + $0x48] sm:$0xff] }
  0xd0   :  { %1105 = verf.f32 %v229_v34  ;;  %v1028_v24 = vpack.c.bf16 %v399_v22, %v398_v21  ;;  %v401_v34 = vld [vmem:[#allocation2 + $0x268] sm:$0xff]  ;;  %v677_v22 = vld [vmem:[%s1482_s10 + $0x30] sm:$0xff] }
  0xd1   :  { %v187_v4 = vadd.f32 %v186_v31, %v182_v37  ;;  %v246_v45 = vpop.permute.xlu1 %245 }
  0xd2   :  { %v252_v46 = vmul.f32 %v251_v35, %v246_v45  ;;  %1013 = vmatpush3.bf16.msra.mxu0 %v1012_v36  ;;  %v403_v45 = vld [vmem:[#allocation2 + $0x278] sm:$0xff] }
  0xd3   :  { %v189_v49 = vmul.f32 0.70710677, %v187_v4  ;;  %1015 = vmatprep.subr.bf16.mxu0 %v1014_v38  ;;  %v188_v35 = vmul.f32 0.5, %v187_v4 }
  0xd4   :  { %v262_v53 = vadd.f32 %v261_v5, %v252_v46 }
  0xd5   :  { %v1104_v55 = vpop.eup %1103  ;;  %1107 = verf.f32 %v189_v49 }
  0xd6   :  { %v1387_v56 = vadd.f32 %v266_v47, %v262_v53  ;;  %1017 = vmatpush3.bf16.msra.mxu0 %v1016_v48  ;;  %v235_v57 = vpop.permute.xlu1 %234  ;;  %v311_v59 = vadd.f32 1.0, %v1104_v55 }
  0xd7   :  { %v242_v61 = vmul.f32 %v241_v13, %v235_v57  ;;  %1019 = vmatprep.subr.bf16.mxu0 %v1018_v50  ;;  %v1036_v13 = vpack.c.bf16 %v403_v45, %v402_v43 }
  0xd8   :  { %v269_v1 = vmul.f32 0.70710677, %v1387_v56  ;;  %v312_v2 = vmul.f32 %v311_v59, %v308_v16  ;;  %v268_v4 = vmul.f32 0.5, %v1387_v56 }
  0xda   :  { %v1106_v7 = vpop.eup %1105  ;;  %1109 = verf.f32 %v269_v1  ;;  %1021 = vmatpush3.bf16.msra.mxu0 %v1020_v58  ;;  %v317_v14 = vmul.f32 %v315_v62, %v312_v2  ;;  %v781_v62 = vld [vmem:[%s1479_s7] ss:$0 sm:$0xff] }
  0xdb   :  { %v195_v15 = vpop.permute.xlu1 %194  ;;  %1023 = vmatprep.subr.bf16.mxu0 %v1022_v44  ;;  %v231_v20 = vadd.f32 1.0, %v1106_v7  ;;  %v1039_v7 = vpack.c.bf16 %v672_v10, %v671_v9 }
  0xdc   :  { %v202_v23 = vmul.f32 %v201_v8, %v195_v15  ;;  %624 = vmatprep.mubr.f32.mxu0 %v317_v14  ;;  %v1178_v14 = vmov 0.0|0.0  }
  0xdd   :  { %v232_v29 = vmul.f32 %v231_v20, %v228_v18  ;;  %1038 = vmatprep.subr.bf16.mxu1 %v1178_v14  ;;  %v675_v18 = vld [vmem:[%s1482_s10 + $0x20] sm:$0xff]  ;;  %v676_v20 = vld [vmem:[%s1482_s10 + $0x28] sm:$0xff] }
  0xde   :  { %v203_v30 = vadd.f32 %v202_v23, %v1347_v41  ;;  %1025 = vmatpush3.bf16.msra.mxu0 %v1024_v60  ;;  %v1032_v41 = vpack.c.bf16 %v401_v34, %v400_v33  ;;  %v673_v60 = vld [vmem:[%s1482_s10 + $0x10] sm:$0xff]  ;;  %v1045_v21 = vpack.c.bf16 %v676_v20, %v675_v18  ;;  %v678_v23 = vld [vmem:[%s1482_s10 + $0x38] sm:$0xff] }
  0xdf   :  { %v1108_v31 = vpop.eup %1107  ;;  %1027 = vmatprep.subr.bf16.mxu0 %v1026_v17  ;;  %v237_v26 = vmul.f32 %v235_v57, %v232_v29  ;;  %v1048_v25 = vpack.c.bf16 %v678_v23, %v677_v22  ;;  %v1051_v29 = vpack.c.bf16 %v680_v6, %v679_v28  ;;  %v685_v34 = vld [vmem:[%s1482_s10 + $0x70] sm:$0xff] }
  0xe0   :  { %v191_v36 = vadd.f32 1.0, %v1108_v31  ;;  %v275_v37 = vpop.permute.xlu1 %274  ;;  %v243_v38 = vadd.f32 %v242_v61, %v203_v30  ;;  %v681_v30 = vld [vmem:[%s1482_s10 + $0x50] sm:$0xff] }
  0xe1   :  { %v282_v5 = vmul.f32 %v281_v3, %v275_v37  ;;  %554 = vmatprep.mubr.f32.mxu1 %v237_v26  ;;  %v1180_v3 = vmov 0.0   ;;  %v683_v26 = vld [vmem:[%s1482_s10 + $0x60] sm:$0xff] }
  0xe2   :  { %v192_v19 = vmul.f32 %v191_v36, %v188_v35  ;;  %1029 = vmatpush3.bf16.msra.mxu0 %v1028_v24  ;;  %v682_v24 = vld [vmem:[%s1482_s10 + $0x58] sm:$0xff] }
  0xe3   :  { %v283_v12 = vadd.f32 %v282_v5, %v243_v38  ;;  %1031 = vmatprep.subr.bf16.mxu0 %v1030_v32  ;;  %v1054_v31 = vpack.c.bf16 %v682_v24, %v681_v30  ;;  %v684_v32 = vld [vmem:[%s1482_s10 + $0x68] sm:$0xff]  ;;  %v686_v35 = vld [vmem:[%s1482_s10 + $0x78] sm:$0xff] }
  0xe4   :  { %v1110_v46 = vpop.eup %1109  ;;  %v197_v47 = vmul.f32 %v195_v15, %v192_v19  ;;  %v674_v15 = vld [vmem:[%s1482_s10 + $0x18] sm:$0xff]  ;;  %v1057_v33 = vpack.c.bf16 %v684_v32, %v683_v26  ;;  %v1060_v36 = vpack.c.bf16 %v686_v35, %v685_v34  ;;  %v783_v19 = vld [vmem:[%s1481_s9] ss:$0 sm:$0xff] }
  0xe5   :  { %v271_v48 = vadd.f32 1.0, %v1110_v46  ;;  %v323_v49 = vadd.f32 %v322_v39, %v283_v12  ;;  %v1042_v17 = vpack.c.bf16 %v674_v15, %v673_v60  ;;  %v782_v39 = vld [vmem:[%s1480_s8] ss:$0 sm:$0xff]  ;;  %s772_s8 = sshll.u32 %s1181_s16, 4  ;;  %s773_s8 = int_to_ptr.vmem [resolvable:$true] %s772_s8 }
  0xe6   :  { %1033 = vmatpush3.bf16.msra.mxu0 %v1032_v41  ;;  %555 = vmatmul.mubr.f32.vlgmr.msra.gmra.mrb[0].mxu1 %v197_v47  ;;  %s1137_s9 = scalar_lea.vmem %s773_s8, 128  ;;  %p1142_p9 = scmp.lt.s32.totalorder %s773_s8, %s773_s8 }
  0xe7   :  { %v272_v50 = vmul.f32 %v271_v48, %v268_v4  ;;  %1035 = vmatprep.subr.bf16.mxu0 %v1034_v42  ;;  %1040 = vmatpush3.bf16.msra.mxu1 %v1039_v7  ;;  %v784_v4 = vld [vmem:[%s1483_s11] ss:$0 sm:$0xff]  ;;  %p1138_p8 = scmp.ne.s32.totalorder %s773_s8, %s1137_s9  ;;  %p1143_p10 = scmp.lt.s32.totalorder %s1137_s9, %s1137_s9 }
  0xe8   :  { %1041 = vmatprep.subr.bf16.mxu1 %v1178_v14  ;;  %939 = vmatprep.mubr.msk.f32.mxu1 %vm1179_vm0, %v1180_v3 }
  0xe9   :  { %v277_v51 = vmul.f32 %v275_v37, %v272_v50  ;;  %p1144_p11 = por %p1143_p10, %p1142_p9 }
  0xea   :  { %1037 = vmatpush3.bf16.msra.mxu0 %v1036_v13 }
  0xeb   :  { %1043 = vmatpush3.bf16.msra.mxu1 %v1042_v17  ;;  %p1145_p12 = pnand %p1144_p11, %p1138_p8 }
  0xec   :  { %1044 = vmatprep.subr.bf16.mxu1 %v1178_v14 }
  0xed   :  { %625 = vmatmul.mubr.f32.vlgmr.msra.gmra.mrb[2].mxu0 %v277_v51 }
  0xef   :  { %1046 = vmatpush3.bf16.msra.mxu1 %v1045_v21 }
  0xf0   :  { %1047 = vmatprep.subr.bf16.mxu1 %v1178_v14 }
  0xf3   :  { %1049 = vmatpush3.bf16.msra.mxu1 %v1048_v25 }
  0xf4   :  { %1050 = vmatprep.subr.bf16.mxu1 %v1178_v14 }
  0xf7   :  { %1052 = vmatpush3.bf16.msra.mxu1 %v1051_v29 }
  0xf8   :  { %1053 = vmatprep.subr.bf16.mxu1 %v1178_v14 }
  0xfb   :  { %1055 = vmatpush3.bf16.msra.mxu1 %v1054_v31 }
  0xfc   :  { %1056 = vmatprep.subr.bf16.mxu1 %v1178_v14 }
  0xff   :  { %1058 = vmatpush3.bf16.msra.mxu1 %v1057_v33 }
 0x100   :  { %1059 = vmatprep.subr.bf16.mxu1 %v1178_v14 }
 0x103   :  { %1061 = vmatpush3.bf16.msra.mxu1 %v1060_v36 }
 0x1a0   :  { %v817_v52 = vpop.f32.mrb[0].mxu0 }
 0x1a1   :  { %v818_v53 = vpop.f32.mrb[1].mxu0 }
 0x1a2   :  { %v819_v54 = vadd.f32 %v818_v53, %v817_v52 }
 0x1a4   :  { %v487_v27 = vadd.f32 %v819_v54, %v323_v49 }
 0x1b9   :  { %v852_v55 = vpop.f32.mrb[0].mxu1 }
 0x1ba   :  { %v853_v57 = vpop.f32.mrb[1].mxu1 }
 0x1bb   :  { %v854_v58 = vadd.f32 %v853_v57, %v852_v55 }
 0x1bd   :  { %v557_v16 = vadd.f32 %v854_v58, %v487_v27 }
 0x1c0   :  { %v887_v59 = vpop.f32.mrb[2].mxu0 }
 0x1c1   :  { %v888_v56 = vpop.f32.mrb[3].mxu0 }
 0x1c2   :  { %v889_v61 = vadd.f32 %v888_v56, %v887_v59 }
 0x1c4   :  { %v627_v44 = vadd.f32 %v889_v61, %v557_v16 }
 0x1c6   :  { %v637_v63 = vadd.f32 %v781_v62, %v627_v44 }
 0x1c8   :  { %638 = vadd.xlane.f32.xlu1 %v637_v63 }
 0x255   :  { %v639_v0 = vpop.xlane.xlu1 %638 }
 0x256   :  { %v641_v1 = vmul.f32 0.0078125, %v639_v0 }
 0x258   :  { %v642_v2 = vsub.f32 %v637_v63, %v641_v1 }
 0x25a   :  { %v643_v8 = vmul.f32 %v642_v2, %v642_v2 }
 0x25c   :  { %644 = vadd.xlane.f32.xlu0 %v643_v8 }
 0x2e9   :  { %v645_v37 = vpop.xlane.xlu0 %644 }
 0x2ea   :  { %v646_v38 = vmul.f32 0.0078125, %v645_v37 }
 0x2ec   :  { %v647_v11 = vadd.f32 1e-05, %v646_v38 }
 0x2ee   :  { %1111 = vrsqrt.f32 %v647_v11 }
 0x2f8   :  { %v1112_v40 = vpop.eup %1111 }
 0x2f9   :  { %v649_v5 = vmul.f32 %v1112_v40, %v642_v2 }
 0x2fb   :  { %v657_v41 = vmul.f32 %v782_v39, %v649_v5 }
 0x2fd   :  { %v665_v12 = vadd.f32 %v783_v19, %v657_v41 }
 0x2ff   :  { %v667_v42 = vmul.f32 0.70710677, %v665_v12  ;;  %v666_v45 = vmul.f32 0.5, %v665_v12 }
 0x301   :  { %1113 = verf.f32 %v667_v42 }
 0x30b   :  { %v1114_v43 = vpop.eup %1113 }
 0x30c   :  { %v669_v46 = vadd.f32 1.0, %v1114_v43 }
 0x30e   :  { %v670_v47 = vmul.f32 %v669_v46, %v666_v45 }
 0x310   :  { %940 = vmatmul.mubr.f32.vlgmr.msra.gmra.mrb[2].mxu1 %v670_v47 }
 0x3e3   :  { %v760_v48 = vpop.f32.mrb[2].mxu1 }
 0x3e4   :  { %v761_v49 = vadd.f32 %v784_v4, %v760_v48  ;;  %v941_v13 = vpop.f32.mrb[3].mxu1 }
 0x3e6   :  { %765 = vst.msk [vmem:[#allocation5] sm:$0xff] %vm764_vm1, %v761_v49 }
 0x3e7   :  { %1148 = shalt.err (!%p1145_p12)
}
 0x3e8   :  { %s1149_s18 = scalar_lea.hbm %s1484_s12, 128 }
 0x3e9   :  { %p1150_p13 = scmp.ne.s32.totalorder %s1484_s12, %s1149_s18  ;;  %p1153_p0 = scmp.lt.u32.totalorder %s1149_s18, %s1484_s12 }
 0x3eb   :  { %p1155_p1 = pnand %p1153_p0, %p1150_p13 }
 0x3ed   :  { %1158 = shalt.err (!%p1155_p1)
}
 0x3ee   :  { %775 = dma.vmem_to_hbm [thread:$0]  %s773_s8, 128, %s1484_s12, [#allocation4]  }
 0x3ef   :  { %1161 = dma.done.wait [#allocation4], 128  }
 0x3f0   :  { %1162 = vsyncadd [#allocation4], 4294967168 }
 0x3f1   :  { %779 = vsyncpa [#allocation3], 1 }
 0x3f2   :  { %780 = vsyncpa [#allocation4], 1 }

</bundles_post_ra>
